<compile_context>
chip_gen: v7x
topology: tpu7x:2x2x1
jax: 0.10.0
libtpu: 0.0.40
codegen_flags: <defaults>
</compile_context>

<pallas_src>
import functools

import jax
import jax.numpy as jnp
from jax.experimental import pallas as pl
from jax.experimental.pallas import tpu as pltpu

_LANE = 128      # vreg lane width (last dim)
_SUBLANE = 8     # vreg sublane width (second-to-last dim)


def _round_up(x, m):
    return ((x + m - 1) // m) * m


def _cdiv(a, b):
    return -(-a // b)


def _mlp_kernel(x_ref, *refs, true_out_dims, acts, matmul_dtype):
    """Fused MLP: chain of (matmul + bias [+ ReLU]) entirely in VMEM/vregs.

    refs = (w_0, b_0, ..., w_{L-1}, b_{L-1}, out)
    Weights are (true_K, padded_N); biases are (1, padded_N).
    """
    n_layers = len(acts)
    o_ref = refs[-1]

    h = x_ref[...]                                     # (tb, D_in)
    for k in range(n_layers):
        w_ref = refs[2 * k]
        b_ref = refs[2 * k + 1]
        y = jnp.dot(h.astype(matmul_dtype), w_ref[...].astype(matmul_dtype),
                    preferred_element_type=jnp.float32)
        y = y + b_ref[...]                             # (1, Np) broadcast add
        if acts[k]:
            y = jnp.maximum(y, 0.0)
        if k + 1 < n_layers:
            # Drop the (exactly-zero) padded lanes so the next matmul keeps
            # its true K: no K-padded weight DMA, no zero-row MXU passes.
            h = y[:, :true_out_dims[k]]
        else:
            h = y
    o_ref[...] = h.astype(o_ref.dtype)


def pad_params(params, weight_dtype=jnp.float32):
    """Lane-dense padding of weights/biases, done ONCE (outside the hot path).

    params: list of (W[(d_in, d_out)], b[(d_out,)], has_activation).
    Returns list of (W_p[(d_in, d_out_p)], b_p[(1, d_out_p)], has_act, d_out)
    with d_out_p = round_up(d_out, 128).  Padded lanes are exactly zero, so
    numerics are unchanged.
    """
    padded = []
    for w, b, has_act in params:
        d_in, d_out = w.shape
        d_out_p = _round_up(d_out, _LANE)
        w_p = jnp.zeros((d_in, d_out_p), weight_dtype)
        w_p = w_p.at[:, :d_out].set(w.astype(weight_dtype))
        b_p = jnp.zeros((1, d_out_p), jnp.float32)
        b_p = b_p.at[0, :d_out].set(b.astype(jnp.float32))
        padded.append((w_p, b_p, bool(has_act), d_out))
    return padded


def feedforward_nn_forward(x, padded_params, *, batch_tile=1024,
                           matmul_dtype=jnp.float32):
    """Applies each (Linear [+ ReLU]) layer, fused into one pallas_call.

    `padded_params` must come from pad_params() (padding is pre-done there).
    On v6e/v7x pass matmul_dtype=jnp.bfloat16 for MXU-native throughput.
    """
    B, d_in = x.shape
    acts = tuple(p[2] for p in padded_params)
    true_out_dims = tuple(p[3] for p in padded_params)
    out_dims_p = tuple(p[0].shape[1] for p in padded_params)
    d_out_last = true_out_dims[-1]
    d_out_last_p = out_dims_p[-1]

    # --- Batch tiling: 8-aligned tiles, at most ~one tile of padding, and a
    # grid of >= 2 steps once the batch can feed both v7x TensorCores. ---
    bp0 = _round_up(max(B, 1), _SUBLANE)
    tb_cap = min(max(_SUBLANE, _round_up(batch_tile, _SUBLANE)), bp0)
    n_tiles = _cdiv(bp0, tb_cap)
    if bp0 >= 2 * _LANE and n_tiles < 2:
        n_tiles = 2
    tb = _round_up(_cdiv(bp0, n_tiles), _SUBLANE)
    bp = n_tiles * tb

    x_in = x
    if bp != B:
        x_in = jnp.zeros((bp, d_in), x.dtype).at[:B, :].set(x)

    kernel = functools.partial(
        _mlp_kernel, true_out_dims=true_out_dims, acts=acts,
        matmul_dtype=matmul_dtype)

    # Block specs: x / out tiled over batch, weights + biases fully resident
    # (constant block index -> DMA'd once, stay in VMEM across grid steps).
    in_specs = [pl.BlockSpec((tb, d_in), lambda i: (i, 0))]
    flat_inputs = [x_in]
    for w_p, b_p, _, _ in padded_params:
        in_specs.append(pl.BlockSpec(w_p.shape, lambda i: (0, 0)))
        in_specs.append(pl.BlockSpec(b_p.shape, lambda i: (0, 0)))
        flat_inputs.append(w_p)
        flat_inputs.append(b_p)
    out_spec = pl.BlockSpec((tb, d_out_last_p), lambda i: (i, 0))

    itemsize = jnp.dtype(x.dtype).itemsize
    flops = 2 * bp * sum(int(w.shape[0]) * int(w.shape[1])
                         for w, _, _, _ in padded_params)
    bytes_accessed = (
        int(x_in.size) * itemsize
        + sum(int(w.size) * jnp.dtype(w.dtype).itemsize + int(b.size) * 4
              for w, b, _, _ in padded_params)
        + bp * d_out_last_p * itemsize)

    out_p = pl.pallas_call(
        kernel,
        out_shape=jax.ShapeDtypeStruct((bp, d_out_last_p), x.dtype),
        grid_spec=pltpu.PrefetchScalarGridSpec(
            num_scalar_prefetch=0,
            grid=(n_tiles,),
            in_specs=in_specs,
            out_specs=out_spec,
        ),
        compiler_params=pltpu.CompilerParams(
            dimension_semantics=("parallel",),   # batch axis -> both v7x TCs
        ),
        cost_estimate=pl.CostEstimate(
            flops=flops, transcendentals=0, bytes_accessed=bytes_accessed),
    )(*flat_inputs)

    # Strip batch / lane padding (no-op when nothing was padded).
    if bp != B or d_out_last_p != d_out_last:
        return out_p[:B, :d_out_last]
    return out_p


def init_params(key, input_size, layers_list, dtype=jnp.float32):
    """Deterministic init matching the shapes nn.Linear would create.

    layers_list: list of (size, has_activation) pairs.
    Returns list of (W[(d_in, d_out)], b[(d_out,)], has_activation).
    """
    params = []
    d_in = input_size
    for size, has_act in layers_list:
        key, kw, kb = jax.random.split(key, 3)
        bound = 1.0 / (d_in ** 0.5)     # PyTorch default Linear init range
        w = jax.random.uniform(kw, (d_in, size), dtype, minval=-bound, maxval=bound)
        b = jax.random.uniform(kb, (size,), dtype, minval=-bound, maxval=bound)
        params.append((w, b, has_act))
        d_in = size
    return params


if __name__ == "__main__":
    key = jax.random.PRNGKey(0)

    # Small shapes consistent with the module: batch=8, input_size=32,
    # layers_list = [(64, ReLU), (32, ReLU), (16, None)]
    batch = 8
    input_size = 32
    layers_list = [(64, True), (32, True), (16, False)]

    key, kx = jax.random.split(key)
    x = jax.random.normal(kx, (batch, input_size), jnp.float32)

    params = init_params(key, input_size, layers_list)
    padded_params = pad_params(params)     # padding hoisted out of forward path

    out = feedforward_nn_forward(x, padded_params)
    out = jax.block_until_ready(out)

    # Pure-JAX reference check
    ref = x
    for w, b, has_act in params:
        ref = ref @ w + b
        if has_act:
            ref = jnp.maximum(ref, 0.0)
    assert out.shape == (batch, layers_list[-1][0])
    assert jnp.allclose(out, ref, atol=1e-5, rtol=1e-5)

    print("KERNEL_OK")
</pallas_src>

<mosaic_0001>
module attributes {stable_mosaic.version = 11 : i64} {
  func.func @_mlp_kernel(%arg0: i32, %arg1: memref<8x32xf32, #tpu.memory_space<vmem>>, %arg2: memref<32x128xf32, #tpu.memory_space<vmem>>, %arg3: memref<1x128xf32, #tpu.memory_space<vmem>>, %arg4: memref<64x128xf32, #tpu.memory_space<vmem>>, %arg5: memref<1x128xf32, #tpu.memory_space<vmem>>, %arg6: memref<32x128xf32, #tpu.memory_space<vmem>>, %arg7: memref<1x128xf32, #tpu.memory_space<vmem>>, %arg8: memref<8x128xf32, #tpu.memory_space<vmem>>) attributes {dimension_semantics = [#tpu.dimension_semantics<parallel>], iteration_bounds = array<i64: 1>, scalar_prefetch = 0 : i64, scratch_operands = 0 : i64, tpu.core_type = #tpu.core_type<tc>, window_params = [{transform_indices = @transform_0, window_bounds = array<i64: 8, 32>}, {pipeline_mode = #tpu.pipeline_mode<synchronous>, transform_indices = @transform_1, window_bounds = array<i64: 32, 128>}, {pipeline_mode = #tpu.pipeline_mode<synchronous>, transform_indices = @transform_2, window_bounds = array<i64: 1, 128>}, {pipeline_mode = #tpu.pipeline_mode<synchronous>, transform_indices = @transform_3, window_bounds = array<i64: 64, 128>}, {pipeline_mode = #tpu.pipeline_mode<synchronous>, transform_indices = @transform_4, window_bounds = array<i64: 1, 128>}, {pipeline_mode = #tpu.pipeline_mode<synchronous>, transform_indices = @transform_5, window_bounds = array<i64: 32, 128>}, {pipeline_mode = #tpu.pipeline_mode<synchronous>, transform_indices = @transform_6, window_bounds = array<i64: 1, 128>}, {transform_indices = @transform_7, window_bounds = array<i64: 8, 128>}]} {
    %c0 = arith.constant 0 : index
    %c0_0 = arith.constant 0 : index
    %0 = vector.load %arg1[%c0, %c0_0] : memref<8x32xf32, #tpu.memory_space<vmem>>, vector<8x32xf32>
    %c0_1 = arith.constant 0 : index
    %c0_2 = arith.constant 0 : index
    %1 = vector.load %arg2[%c0_1, %c0_2] : memref<32x128xf32, #tpu.memory_space<vmem>>, vector<32x128xf32>
    %cst = arith.constant dense<0.000000e+00> : vector<8x128xf32>
    %2 = tpu.matmul %0, %1, %cst {dimension_numbers = #tpu.dot_dimension_numbers<[1], [0], [0], [1], [0, 0, 1, 1], [], []>} : vector<8x32xf32>, vector<32x128xf32>, vector<8x128xf32> -> vector<8x128xf32>
    %c0_3 = arith.constant 0 : index
    %c0_4 = arith.constant 0 : index
    %3 = vector.load %arg3[%c0_3, %c0_4] : memref<1x128xf32, #tpu.memory_space<vmem>>, vector<1x128xf32>
    %4 = vector.broadcast %3 : vector<1x128xf32> to vector<8x128xf32>
    %5 = arith.addf %2, %4 : vector<8x128xf32>
    %cst_5 = arith.constant 0.000000e+00 : f32
    %6 = vector.broadcast %cst_5 : f32 to vector<8x128xf32>
    %7 = arith.maximumf %5, %6 : vector<8x128xf32>
    %8 = vector.extract_strided_slice %7 {offsets = [0, 0], sizes = [8, 64], strides = [1, 1]} : vector<8x128xf32> to vector<8x64xf32>
    %c0_6 = arith.constant 0 : index
    %c0_7 = arith.constant 0 : index
    %9 = vector.load %arg4[%c0_6, %c0_7] : memref<64x128xf32, #tpu.memory_space<vmem>>, vector<64x128xf32>
    %cst_8 = arith.constant dense<0.000000e+00> : vector<8x128xf32>
    %10 = tpu.matmul %8, %9, %cst_8 {dimension_numbers = #tpu.dot_dimension_numbers<[1], [0], [0], [1], [0, 0, 1, 1], [], []>} : vector<8x64xf32>, vector<64x128xf32>, vector<8x128xf32> -> vector<8x128xf32>
    %c0_9 = arith.constant 0 : index
    %c0_10 = arith.constant 0 : index
    %11 = vector.load %arg5[%c0_9, %c0_10] : memref<1x128xf32, #tpu.memory_space<vmem>>, vector<1x128xf32>
    %12 = vector.broadcast %11 : vector<1x128xf32> to vector<8x128xf32>
    %13 = arith.addf %10, %12 : vector<8x128xf32>
    %cst_11 = arith.constant 0.000000e+00 : f32
    %14 = vector.broadcast %cst_11 : f32 to vector<8x128xf32>
    %15 = arith.maximumf %13, %14 : vector<8x128xf32>
    %16 = vector.extract_strided_slice %15 {offsets = [0, 0], sizes = [8, 32], strides = [1, 1]} : vector<8x128xf32> to vector<8x32xf32>
    %c0_12 = arith.constant 0 : index
    %c0_13 = arith.constant 0 : index
    %17 = vector.load %arg6[%c0_12, %c0_13] : memref<32x128xf32, #tpu.memory_space<vmem>>, vector<32x128xf32>
    %cst_14 = arith.constant dense<0.000000e+00> : vector<8x128xf32>
    %18 = tpu.matmul %16, %17, %cst_14 {dimension_numbers = #tpu.dot_dimension_numbers<[1], [0], [0], [1], [0, 0, 1, 1], [], []>} : vector<8x32xf32>, vector<32x128xf32>, vector<8x128xf32> -> vector<8x128xf32>
    %c0_15 = arith.constant 0 : index
    %c0_16 = arith.constant 0 : index
    %19 = vector.load %arg7[%c0_15, %c0_16] : memref<1x128xf32, #tpu.memory_space<vmem>>, vector<1x128xf32>
    %20 = vector.broadcast %19 : vector<1x128xf32> to vector<8x128xf32>
    %21 = arith.addf %18, %20 : vector<8x128xf32>
    %c0_17 = arith.constant 0 : index
    %c0_18 = arith.constant 0 : index
    %22 = vector.load %arg8[%c0_17, %c0_18] : memref<8x128xf32, #tpu.memory_space<vmem>>, vector<8x128xf32>
    tpu.vector_store %arg8[%c0_17, %c0_18], %21 {strides = array<i32>} : memref<8x128xf32, #tpu.memory_space<vmem>>, vector<8x128xf32>,
    return
  }
  func.func @transform_0(%arg0: i32) -> (i32, i32) {
    %c0_i32 = arith.constant 0 : i32
    %c0_i32_0 = arith.constant 0 : i32
    return %arg0, %c0_i32 : i32, i32
  }
  func.func @transform_1(%arg0: i32) -> (i32, i32) {
    %c0_i32 = arith.constant 0 : i32
    %c0_i32_0 = arith.constant 0 : i32
    %c0_i32_1 = arith.constant 0 : i32
    return %c0_i32, %c0_i32_0 : i32, i32
  }
  func.func @transform_2(%arg0: i32) -> (i32, i32) {
    %c0_i32 = arith.constant 0 : i32
    %c0_i32_0 = arith.constant 0 : i32
    %c0_i32_1 = arith.constant 0 : i32
    return %c0_i32, %c0_i32_0 : i32, i32
  }
  func.func @transform_3(%arg0: i32) -> (i32, i32) {
    %c0_i32 = arith.constant 0 : i32
    %c0_i32_0 = arith.constant 0 : i32
    %c0_i32_1 = arith.constant 0 : i32
    return %c0_i32, %c0_i32_0 : i32, i32
  }
  func.func @transform_4(%arg0: i32) -> (i32, i32) {
    %c0_i32 = arith.constant 0 : i32
    %c0_i32_0 = arith.constant 0 : i32
    %c0_i32_1 = arith.constant 0 : i32
    return %c0_i32, %c0_i32_0 : i32, i32
  }
  func.func @transform_5(%arg0: i32) -> (i32, i32) {
    %c0_i32 = arith.constant 0 : i32
    %c0_i32_0 = arith.constant 0 : i32
    %c0_i32_1 = arith.constant 0 : i32
    return %c0_i32, %c0_i32_0 : i32, i32
  }
  func.func @transform_6(%arg0: i32) -> (i32, i32) {
    %c0_i32 = arith.constant 0 : i32
    %c0_i32_0 = arith.constant 0 : i32
    %c0_i32_1 = arith.constant 0 : i32
    return %c0_i32, %c0_i32_0 : i32, i32
  }
  func.func @transform_7(%arg0: i32) -> (i32, i32) {
    %c0_i32 = arith.constant 0 : i32
    %c0_i32_0 = arith.constant 0 : i32
    return %arg0, %c0_i32 : i32, i32
  }
}

</mosaic_0001>

<bundles_post_ra>
// kernel: tpu_custom_call.1
= control target key start
LH: loop header
LB: loop body
LE: loop exit
PB: predicated region body
PF: predicated region fallthrough
CT: control target
= control target key end

     0   :  { %12 = vsyncpa [#allocation3], 0  ;;  %s710_s0 = inlined_call_operand.hbm [shape: f32[8,32], index: 0, kind: input, shape index: {}]   ;;  %s711_s1 = inlined_call_operand.hbm [shape: f32[32,128], index: 1, kind: input, shape index: {}]   ;;  %s712_s2 = inlined_call_operand.vmem [shape: f32[1,128], index: 2, kind: input, shape index: {}]   ;;  %s713_s3 = inlined_call_operand.hbm [shape: f32[64,128], index: 3, kind: input, shape index: {}]   ;;  %s714_s4 = inlined_call_operand.vmem [shape: f32[1,128], index: 4, kind: input, shape index: {}]   ;;  %s715_s5 = inlined_call_operand.hbm [shape: f32[32,128], index: 5, kind: input, shape index: {}]   ;;  %s716_s6 = inlined_call_operand.vmem [shape: f32[1,128], index: 6, kind: input, shape index: {}]   ;;  %s717_s7 = inlined_call_operand.hbm [shape: f32[8,128], index: 7, kind: output, shape index: {}]  }
   0x1   :  { %13 = vsyncpa [#allocation6], 0 }
   0x2   :  { %14 = vsyncpa [#allocation9], 0 }
   0x3   :  { %15 = vsyncpa [#allocation4], 0  ;;  %s577_s24 = smov [#allocation5]   ;;  %s459_s28 = scalar_lea.hbm %s711_s1, 512 }
   0x4   :  { %s31_s25 = sshll.u32 %s577_s24, 4  ;;  %p460_p0 = scmp.ne.s32.totalorder %s711_s1, %s459_s28  ;;  %s32_s25 = int_to_ptr.vmem [resolvable:$true] %s31_s25 }
   0x5   :  { %p463_p1 = scmp.lt.u32.totalorder %s459_s28, %s711_s1 }
   0x7   :  { %p465_p2 = pnand %p463_p1, %p460_p0 }
   0x9   :  { %468 = shalt.err (!%p465_p2)
}
   0xa   :  { %s469_s10 = scalar_lea.vmem %s32_s25, 512  ;;  %p474_p4 = scmp.lt.s32.totalorder %s32_s25, %s32_s25 }
   0xb   :  { %p470_p3 = scmp.ne.s32.totalorder %s32_s25, %s469_s10  ;;  %p475_p5 = scmp.lt.s32.totalorder %s469_s10, %s469_s10 }
   0xd   :  { %p476_p6 = por %p475_p5, %p474_p4 }
   0xf   :  { %p477_p7 = pnand %p476_p6, %p470_p3 }
  0x11   :  { %480 = shalt.err (!%p477_p7)
}
  0x12   :  { %s578_s11 = smov 128   ;;  %s579_s12 = smov 8  }
  0x13   :  { %37 = dma.hbm_to_vmem [thread:$0]  %s711_s1, 512, %s32_s25, [#allocation6], %s578_s11, %s578_s11, %s579_s12  }
  0x14   :  { %s580_s15 = smov [#allocation2]   ;;  %s581_s17 = smov [#allocation7]  }
  0x15   :  { %s22_s16 = sshll.u32 %s580_s15, 4  ;;  %s45_s18 = sshll.u32 %s581_s17, 4  ;;  %s23_s16 = int_to_ptr.vmem [resolvable:$true] %s22_s16  ;;  %s46_s18 = int_to_ptr.vmem [resolvable:$true] %s45_s18 }
  0x16   :  { %s481_s21 = scalar_lea.hbm %s710_s0, 128 }
  0x17   :  { %p482_p8 = scmp.ne.s32.totalorder %s710_s0, %s481_s21  ;;  %p485_p9 = scmp.lt.u32.totalorder %s481_s21, %s710_s0 }
  0x19   :  { %p487_p10 = pnand %p485_p9, %p482_p8 }
  0x1b   :  { %490 = shalt.err (!%p487_p10)
}
  0x1c   :  { %s491_s1 = scalar_lea.vmem %s23_s16, 128  ;;  %p496_p12 = scmp.lt.s32.totalorder %s23_s16, %s23_s16 }
  0x1d   :  { %p492_p11 = scmp.ne.s32.totalorder %s23_s16, %s491_s1  ;;  %p497_p13 = scmp.lt.s32.totalorder %s491_s1, %s491_s1 }
  0x1f   :  { %p498_p0 = por %p497_p13, %p496_p12 }
  0x21   :  { %p499_p1 = pnand %p498_p0, %p492_p11 }
  0x23   :  { %502 = shalt.err (!%p499_p1)
}
  0x24   :  { %25 = dma.hbm_to_vmem [thread:$0]  %s710_s0, 128, %s23_s16, [#allocation3]  }
  0x25   :  { %s503_s30 = scalar_lea.hbm %s713_s3, 1024 }
  0x26   :  { %p504_p2 = scmp.ne.s32.totalorder %s713_s3, %s503_s30  ;;  %p507_p3 = scmp.lt.u32.totalorder %s503_s30, %s713_s3 }
  0x28   :  { %p509_p4 = pnand %p507_p3, %p504_p2 }
  0x2a   :  { %512 = shalt.err (!%p509_p4)
}
  0x2b   :  { %s513_s14 = scalar_lea.vmem %s46_s18, 1024  ;;  %p518_p6 = scmp.lt.s32.totalorder %s46_s18, %s46_s18 }
  0x2c   :  { %p514_p5 = scmp.ne.s32.totalorder %s46_s18, %s513_s14  ;;  %p519_p7 = scmp.lt.s32.totalorder %s513_s14, %s513_s14 }
  0x2e   :  { %p520_p8 = por %p519_p7, %p518_p6 }
  0x30   :  { %p521_p9 = pnand %p520_p8, %p514_p5 }
  0x32   :  { %524 = shalt.err (!%p521_p9)
}
  0x33   :  { %51 = dma.hbm_to_vmem [thread:$0]  %s713_s3, 1024, %s46_s18, [#allocation6], %s578_s11, %s578_s11, %s579_s12  }
  0x34   :  { %s582_s16 = smov [#allocation8]   ;;  %s525_s21 = scalar_lea.hbm %s715_s5, 512 }
  0x35   :  { %s59_s17 = sshll.u32 %s582_s16, 4  ;;  %p526_p10 = scmp.ne.s32.totalorder %s715_s5, %s525_s21  ;;  %s60_s17 = int_to_ptr.vmem [resolvable:$true] %s59_s17 }
  0x36   :  { %p529_p11 = scmp.lt.u32.totalorder %s525_s21, %s715_s5 }
  0x38   :  { %p531_p12 = pnand %p529_p11, %p526_p10 }
  0x3a   :  { %534 = shalt.err (!%p531_p12)
}
  0x3b   :  { %s535_s1 = scalar_lea.vmem %s60_s17, 512  ;;  %p540_p0 = scmp.lt.s32.totalorder %s60_s17, %s60_s17 }
  0x3c   :  { %p536_p13 = scmp.ne.s32.totalorder %s60_s17, %s535_s1  ;;  %p541_p1 = scmp.lt.s32.totalorder %s535_s1, %s535_s1 }
  0x3e   :  { %p542_p2 = por %p541_p1, %p540_p0 }
  0x40   :  { %p543_p3 = pnand %p542_p2, %p536_p13 }
  0x42   :  { %546 = shalt.err (!%p543_p3)
}
  0x43   :  { %65 = dma.hbm_to_vmem [thread:$0]  %s715_s5, 512, %s60_s17, [#allocation9], %s578_s11, %s578_s11, %s579_s12  }
  0x44   :  { %569 = dma.done.wait [#allocation3], 128  }
  0x45   :  { %570 = vsyncadd [#allocation3], 4294967168 }
  0x46   :  { %571 = dma.done.wait [#allocation6], 1536  }
  0x47   :  { %572 = vsyncadd [#allocation6], 4294965760 }
  0x48   :  { %573 = dma.done.wait [#allocation9], 512  }
  0x49   :  { %574 = vsyncadd [#allocation9], 4294966784  ;;  %v583_v0 = vmov 0.0|0.0   ;;  %vm584_vm0 = vmmov 0   ;;  %v585_v1 = vmov 0.0   ;;  %v81_v2 = vld [vmem:[#allocation5] sm:$0xff] }
  0x4a   :  { %425 = vmatprep.subr.bf16.mxu0 %v583_v0  ;;  %392 = vmatprep.mubr.msk.f32.mxu0 %vm584_vm0, %v585_v1  ;;  %v82_v3 = vld [vmem:[#allocation5 + $0x8] sm:$0xff]  ;;  %v83_v4 = vld [vmem:[#allocation5 + $0x10] sm:$0xff]  ;;  %v84_v6 = vld [vmem:[#allocation5 + $0x18] sm:$0xff]  ;;  %vm92_vm1 = vcmask 261120   ;;  %vm182_vm2 = vcmask 523264   ;;  %s586_s28 = smov [#allocation10]  }
  0x4b   :  { %431 = vmatprep.subr.bf16.mxu1 %v583_v0  ;;  %411 = vmatprep.mubr.msk.f32.mxu1 %vm584_vm0, %v585_v1  ;;  %v426_v5 = vpack.c.bf16 %v82_v3, %v81_v2  ;;  %v167_v7 = vld [vmem:[#allocation7] sm:$0xff]  ;;  %v168_v8 = vld [vmem:[#allocation7 + $0x8] sm:$0xff]  ;;  %v169_v9 = vld [vmem:[#allocation7 + $0x10] sm:$0xff]  ;;  %v429_v11 = vpack.c.bf16 %v84_v6, %v83_v4  ;;  %s348_s29 = sshll.u32 %s586_s28, 4  ;;  %s349_s29 = int_to_ptr.vmem [resolvable:$true] %s348_s29 }
  0x4c   :  { %v170_v10 = vld [vmem:[#allocation7 + $0x18] sm:$0xff]  ;;  %v432_v12 = vpack.c.bf16 %v168_v8, %v167_v7  ;;  %v171_v14 = vld [vmem:[#allocation7 + $0x20] sm:$0xff]  ;;  %v172_v15 = vld [vmem:[#allocation7 + $0x28] sm:$0xff]  ;;  %s547_s30 = scalar_lea.vmem %s349_s29, 128  ;;  %p552_p5 = scmp.lt.s32.totalorder %s349_s29, %s349_s29 }
  0x4d   :  { %427 = vmatpush3.bf16.msra.mxu0 %v426_v5  ;;  %v435_v13 = vpack.c.bf16 %v170_v10, %v169_v9  ;;  %v80_v16 = vld [vmem:[#allocation2] sm:$0xff]  ;;  %v438_v17 = vpack.c.bf16 %v172_v15, %v171_v14  ;;  %v173_v18 = vld [vmem:[#allocation7 + $0x30] sm:$0xff]  ;;  %v257_v21 = vld [vmem:[#allocation8] sm:$0xff]  ;;  %p548_p4 = scmp.ne.s32.totalorder %s349_s29, %s547_s30  ;;  %p553_p6 = scmp.lt.s32.totalorder %s547_s30, %s547_s30 }
  0x4e   :  { %428 = vmatprep.subr.bf16.mxu0 %v583_v0  ;;  %433 = vmatpush3.bf16.msra.mxu1 %v432_v12  ;;  %v174_v19 = vld [vmem:[#allocation7 + $0x38] sm:$0xff]  ;;  %v258_v22 = vld [vmem:[#allocation8 + $0x8] sm:$0xff]  ;;  %v259_v29 = vld [vmem:[#allocation8 + $0x10] sm:$0xff] }
  0x4f   :  { %434 = vmatprep.subr.bf16.mxu1 %v583_v0  ;;  %v441_v20 = vpack.c.bf16 %v174_v19, %v173_v18  ;;  %v444_v23 = vpack.c.bf16 %v258_v22, %v257_v21  ;;  %v359_v24 = vld [vmem:[%s712_s2] ss:$0 sm:$0xff]  ;;  %p554_p7 = por %p553_p6, %p552_p5 }
  0x50   :  { %v260_v30 = vld [vmem:[#allocation8 + $0x18] sm:$0xff] }
  0x51   :  { %430 = vmatpush3.bf16.msra.mxu0 %v429_v11  ;;  %v447_v31 = vpack.c.bf16 %v260_v30, %v259_v29  ;;  %v361_v32 = vld [vmem:[%s714_s4] ss:$0 sm:$0xff]  ;;  %p555_p8 = pnand %p554_p7, %p548_p4 }
  0x52   :  { %443 = vmatprep.subr.bf16.mxu0 %v583_v0  ;;  %436 = vmatpush3.bf16.msra.mxu1 %v435_v13  ;;  %v363_v37 = vld [vmem:[%s716_s6] ss:$0 sm:$0xff] }
  0x53   :  { %437 = vmatprep.subr.bf16.mxu1 %v583_v0 }
  0x54   :  { %393 = vmatmul.mubr.msk.f32.vlgmr.msra.gmra.mrb[0].mxu0 %vm92_vm1, %v80_v16 }
  0x55   :  { %422 = vmatprep.mubr.msk.f32.mxu0 %vm584_vm0, %v585_v1  ;;  %445 = vmatpush3.bf16.msra.mxu0 %v444_v23 }
  0x56   :  { %439 = vmatpush3.bf16.msra.mxu1 %v438_v17  ;;  %446 = vmatprep.subr.bf16.mxu0 %v583_v0 }
  0x57   :  { %440 = vmatprep.subr.bf16.mxu1 %v583_v0 }
  0x59   :  { %448 = vmatpush3.bf16.msra.mxu0 %v447_v31 }
  0x5a   :  { %442 = vmatpush3.bf16.msra.mxu1 %v441_v20 }
 0x127   :  { %v162_v25 = vpop.f32.mrb[0].mxu0 }
 0x128   :  { %v163_v26 = vadd.f32 %v359_v24, %v162_v25  ;;  %v394_v27 = vpop.f32.mrb[1].mxu0 }
 0x12a   :  { %v166_v28 = vmax.f32 %v163_v26, 0.0 }
 0x12c   :  { %412 = vmatmul.mubr.msk.f32.vlgmr.msra.gmra.mrb[0].mxu1 %vm182_vm2, %v166_v28 }
 0x1ff   :  { %v252_v33 = vpop.f32.mrb[0].mxu1 }
 0x200   :  { %v253_v34 = vadd.f32 %v361_v32, %v252_v33  ;;  %v413_v35 = vpop.f32.mrb[1].mxu1 }
 0x202   :  { %v256_v36 = vmax.f32 %v253_v34, 0.0 }
 0x204   :  { %423 = vmatmul.mubr.msk.f32.vlgmr.msra.gmra.mrb[2].mxu0 %vm92_vm1, %v256_v36 }
 0x2d7   :  { %v337_v38 = vpop.f32.mrb[2].mxu0 }
 0x2d8   :  { %v338_v39 = vadd.f32 %v363_v37, %v337_v38  ;;  %v424_v40 = vpop.f32.mrb[3].mxu0 }
 0x2da   :  { %341 = vst [vmem:[#allocation10] sm:$0xff] %v338_v39 }
 0x2db   :  { %558 = shalt.err (!%p555_p8)
}
 0x2dc   :  { %s559_s9 = scalar_lea.hbm %s717_s7, 128 }
 0x2dd   :  { %p560_p9 = scmp.ne.s32.totalorder %s717_s7, %s559_s9  ;;  %p563_p10 = scmp.lt.u32.totalorder %s559_s9, %s717_s7 }
 0x2df   :  { %p565_p11 = pnand %p563_p10, %p560_p9 }
 0x2e1   :  { %568 = shalt.err (!%p565_p11)
}
 0x2e2   :  { %351 = dma.vmem_to_hbm [thread:$0]  %s349_s29, 128, %s717_s7, [#allocation4]  }
 0x2e3   :  { %575 = dma.done.wait [#allocation4], 128  }
 0x2e4   :  { %576 = vsyncadd [#allocation4], 4294967168 }
 0x2e5   :  { %355 = vsyncpa [#allocation3], 1 }
 0x2e6   :  { %356 = vsyncpa [#allocation6], 1 }
 0x2e7   :  { %357 = vsyncpa [#allocation9], 1 }
 0x2e8   :  { %358 = vsyncpa [#allocation4], 1 }

</bundles_post_ra>
